<compile_context>
chip_gen: v7x
topology: tpu7x:2x2x1
jax: 0.10.0
libtpu: 0.0.40
codegen_flags: <defaults>
</compile_context>

<pallas_src>
import jax
import jax.numpy as jnp
from jax.experimental import pallas as pl
from jax.experimental.pallas import tpu as pltpu

_LANE = 128
_SUBLANE = 8


def _round_up(x, m):
    return ((x + m - 1) // m) * m


def _pad2(a, rows, cols):
    r, c = a.shape
    return jnp.pad(a, ((0, rows - r), (0, cols - c)))


def mlp_bc_kernel(x_ref, w1_ref, b1_ref, w2_ref, b2_ref, w3_ref, b3_ref, out_ref):
    """One batch tile of the MLP: Linear -> ReLU -> Linear -> ReLU -> Linear -> Tanh.

    x_ref  : (TM, in_p)    bf16  (streamed batch tile, lane-padded)
    w1     : (in_p, h_p)   bf16  (resident)   b1: (1, h_p)   f32
    w2     : (h_p,  h_p)   bf16  (resident)   b2: (1, h_p)   f32
    w3     : (h_p, act_p)  bf16  (resident)   b3: (1, act_p) f32
    out    : (TM, act_p)   f32
    """
    x = x_ref[...]
    h = jnp.dot(x, w1_ref[...], preferred_element_type=jnp.float32) + b1_ref[...]
    h = jnp.maximum(h, 0.0)                                   # ReLU (Dropout == identity)
    h = jnp.dot(h.astype(jnp.bfloat16), w2_ref[...],
                preferred_element_type=jnp.float32) + b2_ref[...]
    h = jnp.maximum(h, 0.0)                                   # ReLU (Dropout == identity)
    a = jnp.dot(h.astype(jnp.bfloat16), w3_ref[...],
                preferred_element_type=jnp.float32) + b3_ref[...]
    out_ref[...] = jnp.tanh(a)                                # final Tanh (f32)


def init_params(key, state_dim, act_dim, h_dim, context_len):
    """Deterministic parameter init (nn.Linear-style shapes, stored transposed (in,out))."""
    in_dim = context_len * state_dim
    k1, k2, k3, k4, k5, k6 = jax.random.split(key, 6)

    def uinit(k, shape, fan_in):
        bound = 1.0 / jnp.sqrt(fan_in)
        return jax.random.uniform(k, shape, jnp.float32, -bound, bound)

    w1 = uinit(k1, (in_dim, h_dim), in_dim)
    b1 = uinit(k2, (1, h_dim), in_dim)
    w2 = uinit(k3, (h_dim, h_dim), h_dim)
    b2 = uinit(k4, (1, h_dim), h_dim)
    w3 = uinit(k5, (h_dim, act_dim), h_dim)
    b3 = uinit(k6, (1, act_dim), h_dim)
    return (w1, b1, w2, b2, w3, b3)


def mlp_bc_forward(states, params, context_len, act_dim, *, block_m=256):
    """Mirrors MLPBCModel.forward: returns (None, actions[B, 1, act_dim], None)."""
    B = states.shape[0]
    state_dim = states.shape[-1]
    in_dim = context_len * state_dim

    # Glue: slice last context_len steps + flatten (same as the torch reshape).
    # TODO(synk): fuse this slice/flatten into the kernel via index_map when the
    # latency regime matters; at these shapes the XLA slice is negligible.
    x = states[:, -context_len:].reshape(B, in_dim).astype(jnp.float32)

    w1, b1, w2, b2, w3, b3 = params
    h_dim = w1.shape[1]

    # Lane-pad all contracting / output dims to multiples of 128.
    in_p = _round_up(in_dim, _LANE)
    h_p = _round_up(h_dim, _LANE)
    act_p = _round_up(act_dim, _LANE)

    # Batch tiling: pad to a sublane multiple, then to a whole number of tiles.
    b8 = _round_up(B, _SUBLANE)
    tm = min(block_m, b8)
    grid_m = pl.cdiv(b8, tm)
    b_pad = grid_m * tm

    # bf16 matmul operands (f32 accumulation in-kernel); biases stay f32.
    x_p = _pad2(x, b_pad, in_p).astype(jnp.bfloat16)
    w1_p = _pad2(w1, in_p, h_p).astype(jnp.bfloat16)
    w2_p = _pad2(w2, h_p, h_p).astype(jnp.bfloat16)
    w3_p = _pad2(w3, h_p, act_p).astype(jnp.bfloat16)
    b1_p = _pad2(b1, 1, h_p).astype(jnp.float32)
    b2_p = _pad2(b2, 1, h_p).astype(jnp.float32)
    b3_p = _pad2(b3, 1, act_p).astype(jnp.float32)

    const = lambda i: (0, 0)  # weights/biases stay VMEM-resident across batch tiles
    out_padded = pl.pallas_call(
        mlp_bc_kernel,
        out_shape=jax.ShapeDtypeStruct((b_pad, act_p), jnp.float32),
        grid_spec=pltpu.PrefetchScalarGridSpec(
            num_scalar_prefetch=0,
            grid=(grid_m,),
            in_specs=[
                pl.BlockSpec((tm, in_p), lambda i: (i, 0)),   # streamed activations
                pl.BlockSpec((in_p, h_p), const),
                pl.BlockSpec((1, h_p), const),
                pl.BlockSpec((h_p, h_p), const),
                pl.BlockSpec((1, h_p), const),
                pl.BlockSpec((h_p, act_p), const),
                pl.BlockSpec((1, act_p), const),
            ],
            out_specs=pl.BlockSpec((tm, act_p), lambda i: (i, 0)),
        ),
        compiler_params=pltpu.CompilerParams(
            dimension_semantics=("parallel",),       # shard batch tiles across TCs (v7x)
            vmem_limit_bytes=64 * 1024 * 1024,       # ample headroom incl. v7x's 64 MiB VMEM
        ),
    )(x_p, w1_p, b1_p, w2_p, b2_p, w3_p, b3_p)

    actions = out_padded[:B, :act_dim].reshape(B, 1, act_dim)
    return None, actions, None


def mlp_bc_reference(states, params, context_len, act_dim):
    """Pure-JAX f32 reference for correctness."""
    B = states.shape[0]
    x = states[:, -context_len:].reshape(B, -1).astype(jnp.float32)
    w1, b1, w2, b2, w3, b3 = params
    h = jnp.maximum(x @ w1 + b1, 0.0)
    h = jnp.maximum(h @ w2 + b2, 0.0)
    return jnp.tanh(h @ w3 + b3).reshape(B, 1, act_dim)


if __name__ == "__main__":
    # Shapes implied by the module: (B, T, state_dim) states, context_len window,
    # h_dim hidden, act_dim outputs, n_blocks=2 (-> three Linear layers total).
    B, T, state_dim = 2, 8, 4
    context_len, h_dim, act_dim = 4, 32, 4

    key = jax.random.PRNGKey(0)
    k_states, k_params, k_big = jax.random.split(key, 3)
    states = jax.random.normal(k_states, (B, T, state_dim), jnp.float32)
    params = init_params(k_params, state_dim, act_dim, h_dim, context_len)

    _, actions, _ = mlp_bc_forward(states, params, context_len, act_dim)
    actions = jax.block_until_ready(actions)
    ref = mlp_bc_reference(states, params, context_len, act_dim)
    assert actions.shape == (B, 1, act_dim), actions.shape
    assert jnp.allclose(actions, ref, atol=3e-2, rtol=3e-2), "mismatch vs reference (small batch)"

    # Second check with a batch large enough to exercise multiple grid tiles.
    B_big = 300
    states_big = jax.random.normal(k_big, (B_big, T, state_dim), jnp.float32)
    _, actions_big, _ = mlp_bc_forward(states_big, params, context_len, act_dim)
    actions_big = jax.block_until_ready(actions_big)
    ref_big = mlp_bc_reference(states_big, params, context_len, act_dim)
    assert actions_big.shape == (B_big, 1, act_dim), actions_big.shape
    assert jnp.allclose(actions_big, ref_big, atol=3e-2, rtol=3e-2), "mismatch vs reference (big batch)"

    print("KERNEL_OK")
</pallas_src>

<mosaic_0001>
module attributes {stable_mosaic.version = 11 : i64} {
  func.func @mlp_bc_kernel(%arg0: i32, %arg1: memref<8x128xbf16, #tpu.memory_space<vmem>>, %arg2: memref<128x128xbf16, #tpu.memory_space<vmem>>, %arg3: memref<1x128xf32, #tpu.memory_space<vmem>>, %arg4: memref<128x128xbf16, #tpu.memory_space<vmem>>, %arg5: memref<1x128xf32, #tpu.memory_space<vmem>>, %arg6: memref<128x128xbf16, #tpu.memory_space<vmem>>, %arg7: memref<1x128xf32, #tpu.memory_space<vmem>>, %arg8: memref<8x128xf32, #tpu.memory_space<vmem>>) attributes {dimension_semantics = [#tpu.dimension_semantics<parallel>], iteration_bounds = array<i64: 1>, scalar_prefetch = 0 : i64, scratch_operands = 0 : i64, tpu.core_type = #tpu.core_type<tc>, window_params = [{transform_indices = @transform_0, window_bounds = array<i64: 8, 128>}, {pipeline_mode = #tpu.pipeline_mode<synchronous>, transform_indices = @transform_1, window_bounds = array<i64: 128, 128>}, {pipeline_mode = #tpu.pipeline_mode<synchronous>, transform_indices = @transform_2, window_bounds = array<i64: 1, 128>}, {pipeline_mode = #tpu.pipeline_mode<synchronous>, transform_indices = @transform_3, window_bounds = array<i64: 128, 128>}, {pipeline_mode = #tpu.pipeline_mode<synchronous>, transform_indices = @transform_4, window_bounds = array<i64: 1, 128>}, {pipeline_mode = #tpu.pipeline_mode<synchronous>, transform_indices = @transform_5, window_bounds = array<i64: 128, 128>}, {pipeline_mode = #tpu.pipeline_mode<synchronous>, transform_indices = @transform_6, window_bounds = array<i64: 1, 128>}, {transform_indices = @transform_7, window_bounds = array<i64: 8, 128>}]} {
    %c0 = arith.constant 0 : index
    %c0_0 = arith.constant 0 : index
    %0 = vector.load %arg1[%c0, %c0_0] : memref<8x128xbf16, #tpu.memory_space<vmem>>, vector<8x128xbf16>
    %c0_1 = arith.constant 0 : index
    %c0_2 = arith.constant 0 : index
    %1 = vector.load %arg2[%c0_1, %c0_2] : memref<128x128xbf16, #tpu.memory_space<vmem>>, vector<128x128xbf16>
    %cst = arith.constant dense<0.000000e+00> : vector<8x128xf32>
    %2 = tpu.matmul %0, %1, %cst {dimension_numbers = #tpu.dot_dimension_numbers<[1], [0], [0], [1], [0, 0, 1, 1], [], []>} : vector<8x128xbf16>, vector<128x128xbf16>, vector<8x128xf32> -> vector<8x128xf32>
    %c0_3 = arith.constant 0 : index
    %c0_4 = arith.constant 0 : index
    %3 = vector.load %arg3[%c0_3, %c0_4] : memref<1x128xf32, #tpu.memory_space<vmem>>, vector<1x128xf32>
    %4 = vector.broadcast %3 : vector<1x128xf32> to vector<8x128xf32>
    %5 = arith.addf %2, %4 : vector<8x128xf32>
    %cst_5 = arith.constant 0.000000e+00 : f32
    %6 = vector.broadcast %cst_5 : f32 to vector<8x128xf32>
    %7 = arith.maximumf %5, %6 : vector<8x128xf32>
    %8 = arith.truncf %7 : vector<8x128xf32> to vector<8x128xbf16>
    %c0_6 = arith.constant 0 : index
    %c0_7 = arith.constant 0 : index
    %9 = vector.load %arg4[%c0_6, %c0_7] : memref<128x128xbf16, #tpu.memory_space<vmem>>, vector<128x128xbf16>
    %cst_8 = arith.constant dense<0.000000e+00> : vector<8x128xf32>
    %10 = tpu.matmul %8, %9, %cst_8 {dimension_numbers = #tpu.dot_dimension_numbers<[1], [0], [0], [1], [0, 0, 1, 1], [], []>} : vector<8x128xbf16>, vector<128x128xbf16>, vector<8x128xf32> -> vector<8x128xf32>
    %c0_9 = arith.constant 0 : index
    %c0_10 = arith.constant 0 : index
    %11 = vector.load %arg5[%c0_9, %c0_10] : memref<1x128xf32, #tpu.memory_space<vmem>>, vector<1x128xf32>
    %12 = vector.broadcast %11 : vector<1x128xf32> to vector<8x128xf32>
    %13 = arith.addf %10, %12 : vector<8x128xf32>
    %cst_11 = arith.constant 0.000000e+00 : f32
    %14 = vector.broadcast %cst_11 : f32 to vector<8x128xf32>
    %15 = arith.maximumf %13, %14 : vector<8x128xf32>
    %16 = arith.truncf %15 : vector<8x128xf32> to vector<8x128xbf16>
    %c0_12 = arith.constant 0 : index
    %c0_13 = arith.constant 0 : index
    %17 = vector.load %arg6[%c0_12, %c0_13] : memref<128x128xbf16, #tpu.memory_space<vmem>>, vector<128x128xbf16>
    %cst_14 = arith.constant dense<0.000000e+00> : vector<8x128xf32>
    %18 = tpu.matmul %16, %17, %cst_14 {dimension_numbers = #tpu.dot_dimension_numbers<[1], [0], [0], [1], [0, 0, 1, 1], [], []>} : vector<8x128xbf16>, vector<128x128xbf16>, vector<8x128xf32> -> vector<8x128xf32>
    %c0_15 = arith.constant 0 : index
    %c0_16 = arith.constant 0 : index
    %19 = vector.load %arg7[%c0_15, %c0_16] : memref<1x128xf32, #tpu.memory_space<vmem>>, vector<1x128xf32>
    %20 = vector.broadcast %19 : vector<1x128xf32> to vector<8x128xf32>
    %21 = arith.addf %18, %20 : vector<8x128xf32>
    %22 = math.tanh %21 : vector<8x128xf32>
    %c0_17 = arith.constant 0 : index
    %c0_18 = arith.constant 0 : index
    %23 = vector.load %arg8[%c0_17, %c0_18] : memref<8x128xf32, #tpu.memory_space<vmem>>, vector<8x128xf32>
    tpu.vector_store %arg8[%c0_17, %c0_18], %22 {strides = array<i32>} : memref<8x128xf32, #tpu.memory_space<vmem>>, vector<8x128xf32>,
    return
  }
  func.func @transform_0(%arg0: i32) -> (i32, i32) {
    %c0_i32 = arith.constant 0 : i32
    %c0_i32_0 = arith.constant 0 : i32
    return %arg0, %c0_i32 : i32, i32
  }
  func.func @transform_1(%arg0: i32) -> (i32, i32) {
    %c0_i32 = arith.constant 0 : i32
    %c0_i32_0 = arith.constant 0 : i32
    %c0_i32_1 = arith.constant 0 : i32
    return %c0_i32, %c0_i32_0 : i32, i32
  }
  func.func @transform_2(%arg0: i32) -> (i32, i32) {
    %c0_i32 = arith.constant 0 : i32
    %c0_i32_0 = arith.constant 0 : i32
    %c0_i32_1 = arith.constant 0 : i32
    return %c0_i32, %c0_i32_0 : i32, i32
  }
  func.func @transform_3(%arg0: i32) -> (i32, i32) {
    %c0_i32 = arith.constant 0 : i32
    %c0_i32_0 = arith.constant 0 : i32
    %c0_i32_1 = arith.constant 0 : i32
    return %c0_i32, %c0_i32_0 : i32, i32
  }
  func.func @transform_4(%arg0: i32) -> (i32, i32) {
    %c0_i32 = arith.constant 0 : i32
    %c0_i32_0 = arith.constant 0 : i32
    %c0_i32_1 = arith.constant 0 : i32
    return %c0_i32, %c0_i32_0 : i32, i32
  }
  func.func @transform_5(%arg0: i32) -> (i32, i32) {
    %c0_i32 = arith.constant 0 : i32
    %c0_i32_0 = arith.constant 0 : i32
    %c0_i32_1 = arith.constant 0 : i32
    return %c0_i32, %c0_i32_0 : i32, i32
  }
  func.func @transform_6(%arg0: i32) -> (i32, i32) {
    %c0_i32 = arith.constant 0 : i32
    %c0_i32_0 = arith.constant 0 : i32
    %c0_i32_1 = arith.constant 0 : i32
    return %c0_i32, %c0_i32_0 : i32, i32
  }
  func.func @transform_7(%arg0: i32) -> (i32, i32) {
    %c0_i32 = arith.constant 0 : i32
    %c0_i32_0 = arith.constant 0 : i32
    return %arg0, %c0_i32 : i32, i32
  }
}

</mosaic_0001>

<bundles_post_ra>
// kernel: tpu_custom_call.1
= control target key start
LH: loop header
LB: loop body
LE: loop exit
PB: predicated region body
PF: predicated region fallthrough
CT: control target
= control target key end

     0   :  { %12 = vsyncpa [#allocation3], 0  ;;  %s998_s0 = inlined_call_operand.hbm [shape: bf16[8,128], index: 0, kind: input, shape index: {}]   ;;  %s999_s1 = inlined_call_operand.hbm [shape: bf16[128,128], index: 1, kind: input, shape index: {}]   ;;  %s1000_s2 = inlined_call_operand.hbm [shape: f32[1,128], index: 2, kind: input, shape index: {}]   ;;  %s1001_s3 = inlined_call_operand.hbm [shape: bf16[128,128], index: 3, kind: input, shape index: {}]   ;;  %s1002_s4 = inlined_call_operand.hbm [shape: f32[1,128], index: 4, kind: input, shape index: {}]   ;;  %s1003_s5 = inlined_call_operand.hbm [shape: bf16[128,128], index: 5, kind: input, shape index: {}]   ;;  %s1004_s6 = inlined_call_operand.hbm [shape: f32[1,128], index: 6, kind: input, shape index: {}]   ;;  %s1005_s7 = inlined_call_operand.hbm [shape: f32[8,128], index: 7, kind: output, shape index: {}]  }
   0x1   :  { %13 = vsyncpa [#allocation6], 0 }
   0x2   :  { %14 = vsyncpa [#allocation9], 0 }
   0x3   :  { %15 = vsyncpa [#allocation12], 0 }
   0x4   :  { %16 = vsyncpa [#allocation4], 0  ;;  %s811_s24 = smov [#allocation5]   ;;  %s625_s28 = scalar_lea.hbm %s999_s1, 1024 }
   0x5   :  { %s32_s25 = sshll.u32 %s811_s24, 4  ;;  %p626_p0 = scmp.ne.s32.totalorder %s999_s1, %s625_s28  ;;  %s33_s25 = int_to_ptr.vmem [resolvable:$true] %s32_s25 }
   0x6   :  { %p629_p1 = scmp.lt.u32.totalorder %s625_s28, %s999_s1 }
   0x8   :  { %p631_p2 = pnand %p629_p1, %p626_p0 }
   0xa   :  { %634 = shalt.err (!%p631_p2)
}
   0xb   :  { %s635_s10 = scalar_lea.vmem %s33_s25, 1024  ;;  %p640_p4 = scmp.lt.s32.totalorder %s33_s25, %s33_s25 }
   0xc   :  { %p636_p3 = scmp.ne.s32.totalorder %s33_s25, %s635_s10  ;;  %p641_p5 = scmp.lt.s32.totalorder %s635_s10, %s635_s10 }
   0xe   :  { %p642_p6 = por %p641_p5, %p640_p4 }
  0x10   :  { %p643_p7 = pnand %p642_p6, %p636_p3 }
  0x12   :  { %646 = shalt.err (!%p643_p7)
}
  0x13   :  { %s812_s11 = smov 64   ;;  %s813_s12 = smov 4  }
  0x14   :  { %38 = dma.hbm_to_vmem [thread:$0]  %s999_s1, 1024, %s33_s25, [#allocation6], %s812_s11, %s812_s11, %s813_s12  }
  0x15   :  { %s814_s15 = smov [#allocation8]   ;;  %s815_s17 = smov [#allocation11]  }
  0x16   :  { %s54_s16 = sshll.u32 %s814_s15, 4  ;;  %s76_s18 = sshll.u32 %s815_s17, 4  ;;  %s55_s16 = int_to_ptr.vmem [resolvable:$true] %s54_s16  ;;  %s77_s18 = int_to_ptr.vmem [resolvable:$true] %s76_s18 }
  0x17   :  { %s647_s21 = scalar_lea.hbm %s1001_s3, 1024 }
  0x18   :  { %p648_p8 = scmp.ne.s32.totalorder %s1001_s3, %s647_s21  ;;  %p651_p9 = scmp.lt.u32.totalorder %s647_s21, %s1001_s3 }
  0x1a   :  { %p653_p10 = pnand %p651_p9, %p648_p8 }
  0x1c   :  { %656 = shalt.err (!%p653_p10)
}
  0x1d   :  { %s657_s1 = scalar_lea.vmem %s55_s16, 1024  ;;  %p662_p12 = scmp.lt.s32.totalorder %s55_s16, %s55_s16 }
  0x1e   :  { %p658_p11 = scmp.ne.s32.totalorder %s55_s16, %s657_s1  ;;  %p663_p13 = scmp.lt.s32.totalorder %s657_s1, %s657_s1 }
  0x20   :  { %p664_p0 = por %p663_p13, %p662_p12 }
  0x22   :  { %p665_p1 = pnand %p664_p0, %p658_p11 }
  0x24   :  { %668 = shalt.err (!%p665_p1)
}
  0x25   :  { %60 = dma.hbm_to_vmem [thread:$0]  %s1001_s3, 1024, %s55_s16, [#allocation9], %s812_s11, %s812_s11, %s813_s12  }
  0x26   :  { %s669_s30 = scalar_lea.hbm %s1003_s5, 1024 }
  0x27   :  { %p670_p2 = scmp.ne.s32.totalorder %s1003_s5, %s669_s30  ;;  %p673_p3 = scmp.lt.u32.totalorder %s669_s30, %s1003_s5 }
  0x29   :  { %p675_p4 = pnand %p673_p3, %p670_p2 }
  0x2b   :  { %678 = shalt.err (!%p675_p4)
}
  0x2c   :  { %s679_s14 = scalar_lea.vmem %s77_s18, 1024  ;;  %p684_p6 = scmp.lt.s32.totalorder %s77_s18, %s77_s18 }
  0x2d   :  { %p680_p5 = scmp.ne.s32.totalorder %s77_s18, %s679_s14  ;;  %p685_p7 = scmp.lt.s32.totalorder %s679_s14, %s679_s14 }
  0x2f   :  { %p686_p8 = por %p685_p7, %p684_p6 }
  0x31   :  { %p687_p9 = pnand %p686_p8, %p680_p5 }
  0x33   :  { %690 = shalt.err (!%p687_p9)
}
  0x34   :  { %82 = dma.hbm_to_vmem [thread:$0]  %s1003_s5, 1024, %s77_s18, [#allocation12], %s812_s11, %s812_s11, %s813_s12  }
  0x35   :  { %s816_s16 = smov [#allocation2]   ;;  %s817_s19 = smov [#allocation7]  }
  0x36   :  { %s23_s17 = sshll.u32 %s816_s16, 4  ;;  %s45_s20 = sshll.u32 %s817_s19, 4  ;;  %s24_s17 = int_to_ptr.vmem [resolvable:$true] %s23_s17  ;;  %s46_s20 = int_to_ptr.vmem [resolvable:$true] %s45_s20 }
  0x37   :  { %s691_s23 = scalar_lea.hbm %s998_s0, 64 }
  0x38   :  { %p692_p10 = scmp.ne.s32.totalorder %s998_s0, %s691_s23  ;;  %p695_p11 = scmp.lt.u32.totalorder %s691_s23, %s998_s0 }
  0x3a   :  { %p697_p12 = pnand %p695_p11, %p692_p10 }
  0x3c   :  { %700 = shalt.err (!%p697_p12)
}
  0x3d   :  { %s701_s5 = scalar_lea.vmem %s24_s17, 64  ;;  %p706_p0 = scmp.lt.s32.totalorder %s24_s17, %s24_s17 }
  0x3e   :  { %p702_p13 = scmp.ne.s32.totalorder %s24_s17, %s701_s5  ;;  %p707_p1 = scmp.lt.s32.totalorder %s701_s5, %s701_s5 }
  0x40   :  { %p708_p2 = por %p707_p1, %p706_p0 }
  0x42   :  { %p709_p3 = pnand %p708_p2, %p702_p13 }
  0x44   :  { %712 = shalt.err (!%p709_p3)
}
  0x45   :  { %26 = dma.hbm_to_vmem [thread:$0]  %s998_s0, 64, %s24_s17, [#allocation3]  }
  0x46   :  { %s713_s28 = scalar_lea.hbm %s1000_s2, 16 }
  0x47   :  { %p714_p4 = scmp.ne.s32.totalorder %s1000_s2, %s713_s28  ;;  %p717_p5 = scmp.lt.u32.totalorder %s713_s28, %s1000_s2 }
  0x49   :  { %p719_p6 = pnand %p717_p5, %p714_p4 }
  0x4b   :  { %722 = shalt.err (!%p719_p6)
}
  0x4c   :  { %s723_s10 = scalar_lea.vmem %s46_s20, 16  ;;  %s727_s13 = scalar_lea.vmem %s46_s20, 32 }
  0x4d   :  { %p724_p7 = scmp.ne.s32.totalorder %s46_s20, %s723_s10  ;;  %p728_p8 = scmp.lt.s32.totalorder %s46_s20, %s46_s20 }
  0x4e   :  { %p729_p9 = scmp.lt.s32.totalorder %s727_s13, %s723_s10 }
  0x50   :  { %p730_p10 = por %p729_p9, %p728_p8 }
  0x52   :  { %p731_p11 = pnand %p730_p10, %p724_p7 }
  0x54   :  { %734 = shalt.err (!%p731_p11)
}
  0x55   :  { %48 = dma.hbm_to_vmem [thread:$0]  %s1000_s2, 16, %s46_s20, [#allocation6]  }
  0x56   :  { %s818_s3 = smov [#allocation10]   ;;  %s819_s16 = smov [#allocation13]  }
  0x57   :  { %s67_s15 = sshll.u32 %s818_s3, 4  ;;  %s89_s17 = sshll.u32 %s819_s16, 4  ;;  %s68_s15 = int_to_ptr.vmem [resolvable:$true] %s67_s15  ;;  %s90_s17 = int_to_ptr.vmem [resolvable:$true] %s89_s17 }
  0x58   :  { %s735_s22 = scalar_lea.hbm %s1002_s4, 16 }
  0x59   :  { %p736_p12 = scmp.ne.s32.totalorder %s1002_s4, %s735_s22  ;;  %p739_p13 = scmp.lt.u32.totalorder %s735_s22, %s1002_s4 }
  0x5b   :  { %p741_p0 = pnand %p739_p13, %p736_p12 }
  0x5d   :  { %744 = shalt.err (!%p741_p0)
}
  0x5e   :  { %s745_s2 = scalar_lea.vmem %s68_s15, 16  ;;  %s749_s20 = scalar_lea.vmem %s68_s15, 32 }
  0x5f   :  { %p746_p1 = scmp.ne.s32.totalorder %s68_s15, %s745_s2  ;;  %p750_p2 = scmp.lt.s32.totalorder %s68_s15, %s68_s15 }
  0x60   :  { %p751_p3 = scmp.lt.s32.totalorder %s749_s20, %s745_s2 }
  0x62   :  { %p752_p4 = por %p751_p3, %p750_p2 }
  0x64   :  { %p753_p5 = pnand %p752_p4, %p746_p1 }
  0x66   :  { %756 = shalt.err (!%p753_p5)
}
  0x67   :  { %70 = dma.hbm_to_vmem [thread:$0]  %s1002_s4, 16, %s68_s15, [#allocation9]  }
  0x68   :  { %s757_s18 = scalar_lea.hbm %s1004_s6, 16 }
  0x69   :  { %p758_p6 = scmp.ne.s32.totalorder %s1004_s6, %s757_s18  ;;  %p761_p7 = scmp.lt.u32.totalorder %s757_s18, %s1004_s6 }
  0x6b   :  { %p763_p8 = pnand %p761_p7, %p758_p6 }
  0x6d   :  { %766 = shalt.err (!%p763_p8)
}
  0x6e   :  { %s767_s8 = scalar_lea.vmem %s90_s17, 16  ;;  %s771_s9 = scalar_lea.vmem %s90_s17, 32 }
  0x6f   :  { %p768_p9 = scmp.ne.s32.totalorder %s90_s17, %s767_s8  ;;  %p772_p10 = scmp.lt.s32.totalorder %s90_s17, %s90_s17 }
  0x70   :  { %p773_p11 = scmp.lt.s32.totalorder %s771_s9, %s767_s8 }
  0x72   :  { %p774_p12 = por %p773_p11, %p772_p10 }
  0x74   :  { %p775_p13 = pnand %p774_p12, %p768_p9 }
  0x76   :  { %778 = shalt.err (!%p775_p13)
}
  0x77   :  { %92 = dma.hbm_to_vmem [thread:$0]  %s1004_s6, 16, %s90_s17, [#allocation12]  }
  0x78   :  { %801 = dma.done.wait [#allocation3], 64  }
  0x79   :  { %802 = vsyncadd [#allocation3], 4294967232 }
  0x7a   :  { %803 = dma.done.wait [#allocation6], 1040  }
  0x7b   :  { %804 = vsyncadd [#allocation6], 4294966256 }
  0x7c   :  { %805 = dma.done.wait [#allocation9], 1040  }
  0x7d   :  { %806 = vsyncadd [#allocation9], 4294966256 }
  0x7e   :  { %807 = dma.done.wait [#allocation12], 1040  }
  0x7f   :  { %808 = vsyncadd [#allocation12], 4294966256  ;;  %v820_v0 = vmov 0.0   ;;  %vm821_vm0 = vmmov 0   ;;  %v599_v1 = vld [vmem:[#allocation5] sm:$0xff]   ;;  %v600_v2 = vld [vmem:[#allocation5 + $0x8] sm:$0xff]  }
  0x80   :  { %527 = vmatprep.subr.bf16.mxu0 %v820_v0  ;;  %543 = vmatprep.mubr.msk.bf16.mxu0 %vm821_vm0, %v820_v0  ;;  %v601_v3 = vld [vmem:[#allocation5 + $0x10] sm:$0xff]   ;;  %v607_v4 = vld [vmem:[#allocation8] sm:$0xff]   ;;  %v602_v5 = vld [vmem:[#allocation5 + $0x18] sm:$0xff]   ;;  %s822_s6 = smov [#allocation14]  }
  0x81   :  { %547 = vmatprep.subr.bf16.mxu1 %v820_v0  ;;  %563 = vmatprep.mubr.msk.bf16.mxu1 %vm821_vm0, %v820_v0  ;;  %v608_v6 = vld [vmem:[#allocation8 + $0x8] sm:$0xff]   ;;  %v603_v7 = vld [vmem:[#allocation5 + $0x20] sm:$0xff]   ;;  %v609_v8 = vld [vmem:[#allocation8 + $0x10] sm:$0xff]   ;;  %s461_s13 = sshll.u32 %s822_s6, 4  ;;  %s462_s13 = int_to_ptr.vmem [resolvable:$true] %s461_s13 }
  0x82   :  { %528 = vmatpush3.bf16.msra.mxu0 %v599_v1  ;;  %548 = vmatpush3.bf16.msra.mxu1 %v607_v4  ;;  %v604_v9 = vld [vmem:[#allocation5 + $0x28] sm:$0xff]   ;;  %v610_v10 = vld [vmem:[#allocation8 + $0x18] sm:$0xff]   ;;  %v605_v11 = vld [vmem:[#allocation5 + $0x30] sm:$0xff]   ;;  %s779_s0 = scalar_lea.vmem %s462_s13, 128  ;;  %p784_p1 = scmp.lt.s32.totalorder %s462_s13, %s462_s13 }
  0x83   :  { %529 = vmatprep.subr.bf16.mxu0 %v820_v0  ;;  %549 = vmatprep.subr.bf16.mxu1 %v820_v0  ;;  %v611_v12 = vld [vmem:[#allocation8 + $0x20] sm:$0xff]   ;;  %v606_v13 = vld [vmem:[#allocation5 + $0x38] sm:$0xff]   ;;  %v612_v14 = vld [vmem:[#allocation8 + $0x28] sm:$0xff]   ;;  %p780_p0 = scmp.ne.s32.totalorder %s462_s13, %s779_s0  ;;  %p785_p2 = scmp.lt.s32.totalorder %s779_s0, %s779_s0 }
  0x84   :  { %v115_v15 = vld [vmem:[#allocation2] sm:$0xf]  ;;  %v613_v16 = vld [vmem:[#allocation8 + $0x30] sm:$0xff]   ;;  %v615_v18 = vld [vmem:[#allocation11] sm:$0xff]  }
  0x85   :  { %v614_v17 = vld [vmem:[#allocation8 + $0x38] sm:$0xff]   ;;  %v616_v19 = vld [vmem:[#allocation11 + $0x8] sm:$0xff]   ;;  %v619_v22 = vld [vmem:[#allocation11 + $0x20] sm:$0xff]   ;;  %p786_p3 = por %p785_p2, %p784_p1 }
  0x86   :  { %530 = vmatpush3.bf16.msra.mxu0 %v600_v2  ;;  %550 = vmatpush3.bf16.msra.mxu1 %v608_v6  ;;  %v617_v20 = vld [vmem:[#allocation11 + $0x10] sm:$0xff]   ;;  %v618_v21 = vld [vmem:[#allocation11 + $0x18] sm:$0xff]   ;;  %v620_v23 = vld [vmem:[#allocation11 + $0x28] sm:$0xff]  }
  0x87   :  { %531 = vmatprep.subr.bf16.mxu0 %v820_v0  ;;  %551 = vmatprep.subr.bf16.mxu1 %v820_v0  ;;  %v473_v24 = vld [vmem:[#allocation7] ss:$0 sm:$0xff]  ;;  %v621_v32 = vld [vmem:[#allocation11 + $0x30] sm:$0xff]   ;;  %v482_v34 = vld [vmem:[#allocation10] ss:$0 sm:$0xff]  ;;  %p787_p4 = pnand %p786_p3, %p780_p0 }
  0x88   :  { %v622_v33 = vld [vmem:[#allocation11 + $0x38] sm:$0xff]   ;;  %v491_v42 = vld [vmem:[#allocation13] ss:$0 sm:$0xff] }
  0x8a   :  { %532 = vmatpush3.bf16.msra.mxu0 %v601_v3  ;;  %552 = vmatpush3.bf16.msra.mxu1 %v609_v8 }
  0x8b   :  { %533 = vmatprep.subr.bf16.mxu0 %v820_v0  ;;  %553 = vmatprep.subr.bf16.mxu1 %v820_v0 }
  0x8e   :  { %534 = vmatpush3.bf16.msra.mxu0 %v602_v5  ;;  %554 = vmatpush3.bf16.msra.mxu1 %v610_v10 }
  0x8f   :  { %535 = vmatprep.subr.bf16.mxu0 %v820_v0  ;;  %555 = vmatprep.subr.bf16.mxu1 %v820_v0 }
  0x92   :  { %536 = vmatpush3.bf16.msra.mxu0 %v603_v7  ;;  %556 = vmatpush3.bf16.msra.mxu1 %v611_v12 }
  0x93   :  { %537 = vmatprep.subr.bf16.mxu0 %v820_v0  ;;  %557 = vmatprep.subr.bf16.mxu1 %v820_v0 }
  0x96   :  { %538 = vmatpush3.bf16.msra.mxu0 %v604_v9  ;;  %558 = vmatpush3.bf16.msra.mxu1 %v612_v14 }
  0x97   :  { %539 = vmatprep.subr.bf16.mxu0 %v820_v0  ;;  %559 = vmatprep.subr.bf16.mxu1 %v820_v0 }
  0x9a   :  { %540 = vmatpush3.bf16.msra.mxu0 %v605_v11  ;;  %560 = vmatpush3.bf16.msra.mxu1 %v613_v16 }
  0x9b   :  { %541 = vmatprep.subr.bf16.mxu0 %v820_v0  ;;  %561 = vmatprep.subr.bf16.mxu1 %v820_v0 }
  0x9e   :  { %542 = vmatpush3.bf16.msra.mxu0 %v606_v13  ;;  %562 = vmatpush3.bf16.msra.mxu1 %v614_v17 }
  0x9f   :  { %567 = vmatprep.subr.bf16.mxu0 %v820_v0 }
  0xa1   :  { %544 = vmatmul.mubr.bf16.vlgmr.msra.gmra.mrb[0].mxu0 %v115_v15 }
  0xa2   :  { %583 = vmatprep.mubr.msk.bf16.mxu0 %vm821_vm0, %v820_v0  ;;  %568 = vmatpush3.bf16.msra.mxu0 %v615_v18 }
  0xa3   :  { %569 = vmatprep.subr.bf16.mxu0 %v820_v0 }
  0xa6   :  { %570 = vmatpush3.bf16.msra.mxu0 %v616_v19 }
  0xa7   :  { %571 = vmatprep.subr.bf16.mxu0 %v820_v0 }
  0xaa   :  { %572 = vmatpush3.bf16.msra.mxu0 %v617_v20 }
  0xab   :  { %573 = vmatprep.subr.bf16.mxu0 %v820_v0 }
  0xae   :  { %574 = vmatpush3.bf16.msra.mxu0 %v618_v21 }
  0xaf   :  { %575 = vmatprep.subr.bf16.mxu0 %v820_v0 }
  0xb2   :  { %576 = vmatpush3.bf16.msra.mxu0 %v619_v22 }
  0xb3   :  { %577 = vmatprep.subr.bf16.mxu0 %v820_v0 }
  0xb6   :  { %578 = vmatpush3.bf16.msra.mxu0 %v620_v23 }
  0xb7   :  { %579 = vmatprep.subr.bf16.mxu0 %v820_v0 }
  0xba   :  { %580 = vmatpush3.bf16.msra.mxu0 %v621_v32 }
  0xbb   :  { %581 = vmatprep.subr.bf16.mxu0 %v820_v0 }
  0xbe   :  { %582 = vmatpush3.bf16.msra.mxu0 %v622_v33 }
 0x174   :  { %v221_v25 = vpop.f32.mrb[0].mxu0 }
 0x175   :  { %v222_v26 = vadd.f32 %v473_v24, %v221_v25  ;;  %v545_v27 = vpop.f32.mrb[1].mxu0 }
 0x176   :  { %v224_v28 = vpop.f32.mrb[2].mxu0 }
 0x177   :  { %v227_v29 = vmax.f32 %v222_v26, 0.0  ;;  %v546_v30 = vpop.f32.mrb[3].mxu0 }
 0x179   :  { %v228_v31 = vpack.c.bf16 %v227_v29, %v227_v29 }
 0x17b   :  { %564 = vmatmul.mubr.bf16.vlgmr.msra.gmra.mrb[0].mxu1 %v228_v31 }
 0x24e   :  { %v334_v35 = vpop.f32.mrb[0].mxu1 }
 0x24f   :  { %v335_v36 = vadd.f32 %v482_v34, %v334_v35  ;;  %v565_v37 = vpop.f32.mrb[1].mxu1 }
 0x250   :  { %v337_v38 = vpop.f32.mrb[2].mxu1 }
 0x251   :  { %v340_v39 = vmax.f32 %v335_v36, 0.0  ;;  %v566_v40 = vpop.f32.mrb[3].mxu1 }
 0x253   :  { %v341_v41 = vpack.c.bf16 %v340_v39, %v340_v39 }
 0x255   :  { %584 = vmatmul.mubr.bf16.vlgmr.msra.gmra.mrb[4].mxu0 %v341_v41 }
 0x328   :  { %v447_v43 = vpop.f32.mrb[4].mxu0 }
 0x329   :  { %v448_v44 = vadd.f32 %v491_v42, %v447_v43  ;;  %v585_v45 = vpop.f32.mrb[5].mxu0 }
 0x32a   :  { %v450_v46 = vpop.f32.mrb[6].mxu0 }
 0x32b   :  { %623 = vtanh.f32 %v448_v44  ;;  %v586_v47 = vpop.f32.mrb[7].mxu0 }
 0x335   :  { %v624_v48 = vpop.eup %623 }
 0x336   :  { %454 = vst [vmem:[#allocation14] sm:$0xff] %v624_v48 }
 0x337   :  { %790 = shalt.err (!%p787_p4)
}
 0x338   :  { %s791_s15 = scalar_lea.hbm %s1005_s7, 128 }
 0x339   :  { %p792_p5 = scmp.ne.s32.totalorder %s1005_s7, %s791_s15  ;;  %p795_p6 = scmp.lt.u32.totalorder %s791_s15, %s1005_s7 }
 0x33b   :  { %p797_p7 = pnand %p795_p6, %p792_p5 }
 0x33d   :  { %800 = shalt.err (!%p797_p7)
}
 0x33e   :  { %464 = dma.vmem_to_hbm [thread:$0]  %s462_s13, 128, %s1005_s7, [#allocation4]  }
 0x33f   :  { %809 = dma.done.wait [#allocation4], 128  }
 0x340   :  { %810 = vsyncadd [#allocation4], 4294967168 }
 0x341   :  { %468 = vsyncpa [#allocation3], 1 }
 0x342   :  { %469 = vsyncpa [#allocation6], 1 }
 0x343   :  { %470 = vsyncpa [#allocation9], 1 }
 0x344   :  { %471 = vsyncpa [#allocation12], 1 }
 0x345   :  { %472 = vsyncpa [#allocation4], 1 }

</bundles_post_ra>
